<compile_context>
chip_gen: v7x
topology: tpu7x:2x2x1
jax: 0.10.0
libtpu: 0.0.40
codegen_flags: <defaults>
</compile_context>

<pallas_src>
import jax
import jax.numpy as jnp
from jax.experimental import pallas as pl
from jax.experimental.pallas import tpu as pltpu

_MIB = 1024 * 1024


def _round_up(x: int, m: int) -> int:
    return ((x + m - 1) // m) * m


def _choose_tile(extent: int, align: int, cap: int) -> int:
    """Tile size: multiple of `align`, <= cap, minimizing the padded extent."""
    cap = max(align, (cap // align) * align)
    ext_pad = _round_up(extent, align)
    if ext_pad <= cap:
        return ext_pad  # single block along this axis, only alignment padding
    cands = sorted(
        {_round_up(max(align, (cap * num) // den), align)
         for num, den in ((1, 1), (3, 4), (1, 2), (3, 8), (1, 4), (1, 8))},
        reverse=True)
    best_t = cands[0]
    best_pad = _round_up(ext_pad, best_t)
    for t in cands[1:]:
        p = _round_up(ext_pad, t)
        if p < best_pad:          # strict: prefer the larger tile on ties
            best_t, best_pad = t, p
    return best_t


def _device_caps():
    """Per-TPU-generation (tm_cap, tn_cap, tk_cap, vmem_request_clamp)."""
    try:
        kind = jax.devices()[0].device_kind.lower()
    except Exception:
        kind = ""
    if "v7" in kind:
        # 64 MiB physical VMEM per TC: leave headroom for Mosaic scratch.
        return 1024, 1024, 2048, 48 * _MIB
    if "v6" in kind:
        return 1024, 1024, 2048, 100 * _MIB
    if "v5" in kind:
        return 512, 512, 2048, 96 * _MIB
    return 512, 512, 1024, 32 * _MIB  # unknown/older: conservative


def _linear_kernel_acc(x_ref, w_ref, b_ref, o_ref, acc_ref):
    """(tm, tn) output tile accumulated over the K grid axis (axis 2).

    x_ref:   (tm, tk) f32   activations (cast to bf16 on the VPU)
    w_ref:   (tk, tn) bf16  weight already in (K, N) layout -> plain x @ w
    b_ref:   (1,  tn) f32   bias
    o_ref:   (tm, tn)       output tile
    acc_ref: (tm, tn) f32   VMEM accumulator, persists across K steps
    """
    k = pl.program_id(2)

    @pl.when(k == 0)
    def _():
        acc_ref[...] = jnp.zeros_like(acc_ref)

    acc_ref[...] += jnp.dot(
        x_ref[...].astype(jnp.bfloat16), w_ref[...],
        preferred_element_type=jnp.float32)

    @pl.when(k == pl.num_programs(2) - 1)
    def _():
        o_ref[...] = (acc_ref[...] + b_ref[...]).astype(o_ref.dtype)


def _linear_kernel_single_k(x_ref, w_ref, b_ref, o_ref):
    """Single-K-step specialization: no scratch, no pl.when, 2-D grid."""
    acc = jnp.dot(x_ref[...].astype(jnp.bfloat16), w_ref[...],
                  preferred_element_type=jnp.float32)
    o_ref[...] = (acc + b_ref[...]).astype(o_ref.dtype)


@jax.jit
def linear_layer(x, weight_kn, bias):
    """y = x @ weight_kn + bias   (semantics of torch.nn.Linear.forward).

    x:         [batch, input_dim]        float32
    weight_kn: [input_dim, output_dim]   bf16 (PyTorch weight, transposed +
                                         cast ONCE via prepare_linear_params)
    bias:      [output_dim]              float32
    returns    [batch, output_dim]       x.dtype
    """
    batch, input_dim = x.shape
    k_dim, output_dim = weight_kn.shape
    assert k_dim == input_dim

    tm_cap, tn_cap, tk_cap, vmem_cap = _device_caps()

    tm = _choose_tile(batch, 8, tm_cap)
    tn = _choose_tile(output_dim, 128, tn_cap)
    tk = _choose_tile(input_dim, 128, tk_cap)

    m_pad = _round_up(batch, tm)
    n_pad = _round_up(output_dim, tn)
    k_pad = _round_up(input_dim, tk)
    m_blocks, n_blocks, k_blocks = m_pad // tm, n_pad // tn, k_pad // tk

    # Zero-pad so every tile is full and (8,128)-aligned; zero K-padding adds
    # nothing to the dot product, padded M/N rows are sliced off at the end.
    x_p = x
    if (m_pad, k_pad) != (batch, input_dim):
        x_p = jnp.pad(x, ((0, m_pad - batch), (0, k_pad - input_dim)))
    w_p = weight_kn
    if (k_pad, n_pad) != (input_dim, output_dim):
        w_p = jnp.pad(weight_kn, ((0, k_pad - input_dim), (0, n_pad - output_dim)))
    b_p = bias.astype(jnp.float32)
    if n_pad != output_dim:
        b_p = jnp.pad(b_p, ((0, n_pad - output_dim),))
    b2 = b_p.reshape(1, n_pad)

    x_bytes = x_p.dtype.itemsize
    w_bytes = w_p.dtype.itemsize

    # VMEM: double-buffered input tiles + double-buffered output tile (+ acc).
    vmem_needed = (2 * (tm * tk * x_bytes + tk * tn * w_bytes + tn * 4)
                   + 2 * (tm * tn * 4)
                   + (tm * tn * 4 if k_blocks > 1 else 0))
    vmem_limit = int(min(vmem_cap, max(32 * _MIB, 2 * vmem_needed)))

    # Actual tiled HBM traffic: x is re-read once per N block (the re-read is
    # elided when its block index is constant across the innermost sweep, i.e.
    # when k_blocks == 1), the weight once per M block, output written once.
    x_rereads = n_blocks if k_blocks > 1 else 1
    cost = pl.CostEstimate(
        flops=2 * m_pad * n_pad * k_pad,
        transcendentals=0,
        bytes_accessed=(x_rereads * m_pad * k_pad * x_bytes
                        + m_blocks * k_pad * n_pad * w_bytes
                        + m_pad * n_pad * x.dtype.itemsize
                        + m_blocks * n_pad * 4),
    )

    if k_blocks == 1:
        grid_spec = pltpu.PrefetchScalarGridSpec(
            num_scalar_prefetch=0,
            grid=(m_blocks, n_blocks),
            in_specs=[
                pl.BlockSpec((tm, k_pad), lambda i, j: (i, 0)),   # x
                pl.BlockSpec((k_pad, tn), lambda i, j: (0, j)),   # weight (K,N)
                pl.BlockSpec((1, tn), lambda i, j: (0, j)),       # bias
            ],
            out_specs=pl.BlockSpec((tm, tn), lambda i, j: (i, j)),
        )
        kernel = _linear_kernel_single_k
        dim_sem = ("parallel", "parallel")
    else:
        grid_spec = pltpu.PrefetchScalarGridSpec(
            num_scalar_prefetch=0,
            grid=(m_blocks, n_blocks, k_blocks),
            in_specs=[
                pl.BlockSpec((tm, tk), lambda i, j, k: (i, k)),   # x
                pl.BlockSpec((tk, tn), lambda i, j, k: (k, j)),   # weight (K,N)
                pl.BlockSpec((1, tn), lambda i, j, k: (0, j)),    # bias
            ],
            out_specs=pl.BlockSpec((tm, tn), lambda i, j, k: (i, j)),
            scratch_shapes=[pltpu.VMEM((tm, tn), jnp.float32)],
        )
        kernel = _linear_kernel_acc
        dim_sem = ("parallel", "parallel", "arbitrary")

    out_p = pl.pallas_call(
        kernel,
        out_shape=jax.ShapeDtypeStruct((m_pad, n_pad), x.dtype),
        grid_spec=grid_spec,
        compiler_params=pltpu.CompilerParams(
            dimension_semantics=dim_sem,
            vmem_limit_bytes=vmem_limit,
        ),
        cost_estimate=cost,
    )(x_p, w_p, b2)

    return out_p[:batch, :output_dim]


def prepare_linear_params(weight, bias):
    """One-time conversion of PyTorch-layout params for the Pallas forward.

    weight: [output_dim, input_dim] (torch nn.Linear layout).
    Returns (weight_kn, bias_f32) with weight_kn = weight.T cast to bf16, so
    the kernel contracts on the RHS sublane dim with bf16-native MXU operands.
    """
    return jnp.asarray(weight).T.astype(jnp.bfloat16), jnp.asarray(bias, jnp.float32)


def init_linear_layer_params(key, input_dim, output_dim, initial=True):
    """Mirror LinearLayer.__init__ semantics (not bit-identical to torch RNG).

    - weight: xavier_normal_ if initial else zeros  -> [output_dim, input_dim]
    - bias:   nn.Linear default U(-1/sqrt(fan_in), 1/sqrt(fan_in))
    """
    # TODO(synk): torch.manual_seed RNG stream has no JAX equivalent; values differ.
    k_w, k_b = jax.random.split(key)
    if initial:
        std = (2.0 / (input_dim + output_dim)) ** 0.5  # xavier normal, gain=1
        weight = std * jax.random.normal(k_w, (output_dim, input_dim), jnp.float32)
    else:
        weight = jnp.zeros((output_dim, input_dim), jnp.float32)
    bound = 1.0 / (input_dim ** 0.5)
    bias = jax.random.uniform(
        k_b, (output_dim,), jnp.float32, minval=-bound, maxval=bound)
    return weight, bias


if __name__ == "__main__":
    key = jax.random.PRNGKey(0)
    k_x, k_p, k_x2, k_p2 = jax.random.split(key, 4)

    # --- small shape typical of the module (single-K fast path) -------------
    batch, input_dim, output_dim = 8, 32, 16
    x = jax.random.normal(k_x, (batch, input_dim), jnp.float32)
    weight, bias = init_linear_layer_params(k_p, input_dim, output_dim, initial=True)
    w_kn, b32 = prepare_linear_params(weight, bias)

    y = linear_layer(x, w_kn, b32)
    jax.block_until_ready(y)
    y_ref = x @ weight.T + bias
    assert y.shape == (batch, output_dim)
    assert jnp.allclose(y, y_ref, atol=5e-2, rtol=5e-2), \
        float(jnp.max(jnp.abs(y - y_ref)))

    # --- second shape exercising the K-accumulation (multi-K) path ----------
    batch2, in2, out2 = 16, 2304, 48
    x2 = jax.random.normal(k_x2, (batch2, in2), jnp.float32)
    weight2, bias2 = init_linear_layer_params(k_p2, in2, out2, initial=True)
    w_kn2, b32_2 = prepare_linear_params(weight2, bias2)

    y2 = linear_layer(x2, w_kn2, b32_2)
    jax.block_until_ready(y2)
    y2_ref = x2 @ weight2.T + bias2
    assert y2.shape == (batch2, out2)
    assert float(jnp.max(jnp.abs(y2 - y2_ref))) < 0.1

    print("KERNEL_OK")
</pallas_src>

<mosaic_0001>
module attributes {stable_mosaic.version = 11 : i64} {
  func.func @_linear_kernel_single_k(%arg0: i32, %arg1: i32, %arg2: memref<8x128xf32, #tpu.memory_space<vmem>>, %arg3: memref<128x128xbf16, #tpu.memory_space<vmem>>, %arg4: memref<1x128xf32, #tpu.memory_space<vmem>>, %arg5: memref<8x128xf32, #tpu.memory_space<vmem>>) attributes {dimension_semantics = [#tpu.dimension_semantics<parallel>, #tpu.dimension_semantics<parallel>], iteration_bounds = array<i64: 1, 1>, scalar_prefetch = 0 : i64, scratch_operands = 0 : i64, tpu.core_type = #tpu.core_type<tc>, window_params = [{transform_indices = @transform_0, window_bounds = array<i64: 8, 128>}, {transform_indices = @transform_1, window_bounds = array<i64: 128, 128>}, {transform_indices = @transform_2, window_bounds = array<i64: 1, 128>}, {transform_indices = @transform_3, window_bounds = array<i64: 8, 128>}]} {
    %c0 = arith.constant 0 : index
    %c0_0 = arith.constant 0 : index
    %0 = vector.load %arg2[%c0, %c0_0] : memref<8x128xf32, #tpu.memory_space<vmem>>, vector<8x128xf32>
    %1 = arith.truncf %0 : vector<8x128xf32> to vector<8x128xbf16>
    %c0_1 = arith.constant 0 : index
    %c0_2 = arith.constant 0 : index
    %2 = vector.load %arg3[%c0_1, %c0_2] : memref<128x128xbf16, #tpu.memory_space<vmem>>, vector<128x128xbf16>
    %cst = arith.constant dense<0.000000e+00> : vector<8x128xf32>
    %3 = tpu.matmul %1, %2, %cst {dimension_numbers = #tpu.dot_dimension_numbers<[1], [0], [0], [1], [0, 0, 1, 1], [], []>} : vector<8x128xbf16>, vector<128x128xbf16>, vector<8x128xf32> -> vector<8x128xf32>
    %c0_3 = arith.constant 0 : index
    %c0_4 = arith.constant 0 : index
    %4 = vector.load %arg4[%c0_3, %c0_4] : memref<1x128xf32, #tpu.memory_space<vmem>>, vector<1x128xf32>
    %5 = vector.broadcast %4 : vector<1x128xf32> to vector<8x128xf32>
    %6 = arith.addf %3, %5 : vector<8x128xf32>
    %c0_5 = arith.constant 0 : index
    %c0_6 = arith.constant 0 : index
    %7 = vector.load %arg5[%c0_5, %c0_6] : memref<8x128xf32, #tpu.memory_space<vmem>>, vector<8x128xf32>
    tpu.vector_store %arg5[%c0_5, %c0_6], %6 {strides = array<i32>} : memref<8x128xf32, #tpu.memory_space<vmem>>, vector<8x128xf32>,
    return
  }
  func.func @transform_0(%arg0: i32, %arg1: i32) -> (i32, i32) {
    %c0_i32 = arith.constant 0 : i32
    %c0_i32_0 = arith.constant 0 : i32
    return %arg0, %c0_i32 : i32, i32
  }
  func.func @transform_1(%arg0: i32, %arg1: i32) -> (i32, i32) {
    %c0_i32 = arith.constant 0 : i32
    %c0_i32_0 = arith.constant 0 : i32
    return %c0_i32, %arg1 : i32, i32
  }
  func.func @transform_2(%arg0: i32, %arg1: i32) -> (i32, i32) {
    %c0_i32 = arith.constant 0 : i32
    %c0_i32_0 = arith.constant 0 : i32
    return %c0_i32, %arg1 : i32, i32
  }
  func.func @transform_3(%arg0: i32, %arg1: i32) -> (i32, i32) {
    %c0_i32 = arith.constant 0 : i32
    return %arg0, %arg1 : i32, i32
  }
}

</mosaic_0001>

<bundles_post_ra>
// kernel: linear_layer.1
= control target key start
LH: loop header
LB: loop body
LE: loop exit
PB: predicated region body
PF: predicated region fallthrough
CT: control target
= control target key end

     0   :  { %v217_v1 = vmov 0.0   ;;  %vm218_vm0 = vmmov 0   ;;  %s282_s0 = inlined_call_operand.vmem [shape: f32[8,128], index: 0, kind: input, shape index: {}]   ;;  %s283_s1 = inlined_call_operand.vmem [shape: bf16[128,128], index: 1, kind: input, shape index: {}]   ;;  %s284_s2 = inlined_call_operand.vmem [shape: f32[1,128], index: 2, kind: input, shape index: {}]   ;;  %s285_s3 = inlined_call_operand.hbm [shape: f32[8,128], index: 3, kind: output, shape index: {}]  }
   0x1   :  { %v185_v0 = vld [vmem:[%s283_s1] sm:$0xff]   ;;  %162 = vmatprep.subr.bf16.mxu0 %v217_v1  ;;  %v186_v2 = vld [vmem:[%s283_s1 + $0x8] sm:$0xff]   ;;  %178 = vmatprep.mubr.msk.bf16.mxu0 %vm218_vm0, %v217_v1  ;;  %v187_v3 = vld [vmem:[%s283_s1 + $0x10] sm:$0xff]  }
   0x2   :  { %163 = vmatpush3.bf16.msra.mxu0 %v185_v0 }
   0x3   :  { %164 = vmatprep.subr.bf16.mxu0 %v217_v1 }
   0x6   :  { %165 = vmatpush3.bf16.msra.mxu0 %v186_v2 }
   0x7   :  { %166 = vmatprep.subr.bf16.mxu0 %v217_v1 }
   0x8   :  { %8 = vsyncpa [#allocation3], 0  ;;  %v188_v4 = vld [vmem:[%s283_s1 + $0x18] sm:$0xff]   ;;  %v189_v5 = vld [vmem:[%s283_s1 + $0x20] sm:$0xff]   ;;  %s219_s5 = smov [#allocation2]  }
   0x9   :  { %v190_v6 = vld [vmem:[%s283_s1 + $0x28] sm:$0xff]   ;;  %v191_v7 = vld [vmem:[%s283_s1 + $0x30] sm:$0xff]   ;;  %v192_v8 = vld [vmem:[%s283_s1 + $0x38] sm:$0xff]   ;;  %s136_s6 = sshll.u32 %s219_s5, 4  ;;  %s137_s6 = int_to_ptr.vmem [resolvable:$true] %s136_s6 }
   0xa   :  { %167 = vmatpush3.bf16.msra.mxu0 %v187_v3  ;;  %v16_v9 = vld [vmem:[%s282_s0] sm:$0xff]  ;;  %s193_s1 = scalar_lea.vmem %s137_s6, 128  ;;  %p198_p1 = scmp.lt.s32.totalorder %s137_s6, %s137_s6 }
   0xb   :  { %168 = vmatprep.subr.bf16.mxu0 %v217_v1  ;;  %v17_v10 = vpack.c.bf16 %v16_v9, %v16_v9  ;;  %v144_v11 = vld [vmem:[%s284_s2] ss:$0 sm:$0xff]  ;;  %p194_p0 = scmp.ne.s32.totalorder %s137_s6, %s193_s1  ;;  %p199_p2 = scmp.lt.s32.totalorder %s193_s1, %s193_s1 }
   0xd   :  { %p200_p3 = por %p199_p2, %p198_p1 }
   0xe   :  { %169 = vmatpush3.bf16.msra.mxu0 %v188_v4 }
   0xf   :  { %170 = vmatprep.subr.bf16.mxu0 %v217_v1  ;;  %p201_p4 = pnand %p200_p3, %p194_p0 }
  0x12   :  { %171 = vmatpush3.bf16.msra.mxu0 %v189_v5 }
  0x13   :  { %172 = vmatprep.subr.bf16.mxu0 %v217_v1 }
  0x16   :  { %173 = vmatpush3.bf16.msra.mxu0 %v190_v6 }
  0x17   :  { %174 = vmatprep.subr.bf16.mxu0 %v217_v1 }
  0x1a   :  { %175 = vmatpush3.bf16.msra.mxu0 %v191_v7 }
  0x1b   :  { %176 = vmatprep.subr.bf16.mxu0 %v217_v1 }
  0x1e   :  { %177 = vmatpush3.bf16.msra.mxu0 %v192_v8 }
  0x21   :  { %179 = vmatmul.mubr.bf16.vlgmr.msra.gmra.mrb[0].mxu0 %v17_v10 }
  0xf4   :  { %v123_v12 = vpop.f32.mrb[0].mxu0 }
  0xf5   :  { %v124_v13 = vadd.f32 %v144_v11, %v123_v12  ;;  %v180_v14 = vpop.f32.mrb[1].mxu0 }
  0xf6   :  { %v126_v15 = vpop.f32.mrb[2].mxu0 }
  0xf7   :  { %129 = vst [vmem:[#allocation2] sm:$0xff] %v124_v13  ;;  %v181_v16 = vpop.f32.mrb[3].mxu0 }
  0xf8   :  { %204 = shalt.err (!%p201_p4)
}
  0xf9   :  { %s205_s2 = scalar_lea.hbm %s285_s3, 128 }
  0xfa   :  { %p206_p5 = scmp.ne.s32.totalorder %s285_s3, %s205_s2  ;;  %p209_p6 = scmp.lt.u32.totalorder %s205_s2, %s285_s3 }
  0xfc   :  { %p211_p7 = pnand %p209_p6, %p206_p5 }
  0xfe   :  { %214 = shalt.err (!%p211_p7)
}
  0xff   :  { %139 = dma.vmem_to_hbm [thread:$0]  %s137_s6, 128, %s285_s3, [#allocation3]  }
 0x100   :  { %215 = dma.done.wait [#allocation3], 128  }
 0x101   :  { %216 = vsyncadd [#allocation3], 4294967168 }
 0x102   :  { %143 = vsyncpa [#allocation3], 1 }

</bundles_post_ra>
